<compile_context>
chip_gen: v5e
topology: v5e:2x2
jax: 0.10.0
libtpu: 0.0.40
codegen_flags: <defaults>
</compile_context>

<pallas_src>
import math
from functools import partial

import jax
import jax.numpy as jnp
from jax.experimental import pallas as pl
from jax.experimental.pallas import tpu as pltpu

EXPANSION = 4  # Bottleneck expansion


# ----------------------------------------------------------------------------
# Helpers
# ----------------------------------------------------------------------------

def _round_up(n, m):
    return ((n + m - 1) // m) * m


def _pick_h_tile(H, row_bytes, budget=1 << 20):
    """Largest divisor of H whose (th, W, C) f32 block stays under `budget` bytes."""
    best = 1
    for th in range(1, H + 1):
        if H % th == 0 and th * row_bytes <= budget:
            best = th
    return best


# ----------------------------------------------------------------------------
# Tiled MXU matmul (used by 1x1 convs and the im2col fallbacks)
# ----------------------------------------------------------------------------

def _matmul_kernel(a_ref, b_ref, o_ref, acc_ref):
    @pl.when(pl.program_id(2) == 0)
    def _():
        acc_ref[...] = jnp.zeros_like(acc_ref)

    acc_ref[...] += jnp.dot(a_ref[...], b_ref[...],
                            preferred_element_type=jnp.float32)

    @pl.when(pl.program_id(2) == pl.num_programs(2) - 1)
    def _():
        o_ref[...] = acc_ref[...]


def pallas_matmul(a, b):
    """(M, K) @ (K, N) -> (M, N); MXU-aligned tiles, f32 VMEM accumulator."""
    M, K = a.shape
    K2, N = b.shape
    assert K == K2
    tm = min(256, _round_up(M, 8))
    tn = min(256, _round_up(N, 128))
    tk = min(512, _round_up(K, 128))
    Mp, Kp, Np = _round_up(M, tm), _round_up(K, tk), _round_up(N, tn)
    if (Mp, Kp) != (M, K):
        a = jnp.pad(a, ((0, Mp - M), (0, Kp - K)))
    if (Kp, Np) != (K, N):
        b = jnp.pad(b, ((0, Kp - K), (0, Np - N)))
    out = pl.pallas_call(
        _matmul_kernel,
        out_shape=jax.ShapeDtypeStruct((Mp, Np), jnp.float32),
        grid=(Mp // tm, Np // tn, Kp // tk),
        in_specs=[pl.BlockSpec((tm, tk), lambda i, j, k: (i, k)),
                  pl.BlockSpec((tk, tn), lambda i, j, k: (k, j))],
        out_specs=pl.BlockSpec((tm, tn), lambda i, j, k: (i, j)),
        scratch_shapes=[pltpu.VMEM((tm, tn), jnp.float32)],
        compiler_params=pltpu.CompilerParams(
            dimension_semantics=("parallel", "parallel", "arbitrary")),
    )(a, b)
    if (Mp, Np) != (M, N):
        out = out[:M, :N]
    return out


# ----------------------------------------------------------------------------
# Direct 3x3 stride-1 convolution kernel (no HBM im2col): accumulate the 9 taps
# in-kernel from a per-image padded NHWC block.
# ----------------------------------------------------------------------------

def _conv3x3_s1_kernel(xp_ref, w_ref, o_ref, acc_ref):
    # xp_ref : (1, H+2, W+2, Cin)   whole padded image for the current batch item
    # w_ref  : (3, 3, Cin, tco)
    # o_ref  : (1, th, Wo, tco)
    # acc_ref: (th*Wo, tco) f32
    th, wo, tco = o_ref.shape[1], o_ref.shape[2], o_ref.shape[3]
    cin = xp_ref.shape[3]
    row0 = pl.program_id(2) * th
    acc_ref[...] = jnp.zeros_like(acc_ref)
    for di in range(3):
        for dj in range(3):
            patch = xp_ref[0, pl.ds(row0 + di, th), pl.ds(dj, wo), :]   # (th, wo, cin)
            acc_ref[...] += jnp.dot(patch.reshape(th * wo, cin), w_ref[di, dj],
                                    preferred_element_type=jnp.float32)
    o_ref[...] = acc_ref[...].reshape(1, th, wo, tco)


def conv3x3_s1(x, w):
    """3x3, stride 1, pad 1 convolution. Requires W % 8 == 0 (lane/sublane layout)."""
    B, H, W, Cin = x.shape
    Cout = w.shape[3]
    Ho, Wo = H, W
    xp = jnp.pad(x, ((0, 0), (1, 1), (1, 1), (0, 0)))
    tco = Cout if Cout <= 256 else 256
    th = 1
    for cand in range(1, Ho + 1):
        if Ho % cand == 0 and cand * Wo <= 512:
            th = cand
    grid = (B, Cout // tco, Ho // th)
    return pl.pallas_call(
        _conv3x3_s1_kernel,
        out_shape=jax.ShapeDtypeStruct((B, Ho, Wo, Cout), jnp.float32),
        grid=grid,
        in_specs=[pl.BlockSpec((1, H + 2, W + 2, Cin),
                               lambda b, c, h: (b, 0, 0, 0)),
                  pl.BlockSpec((3, 3, Cin, tco),
                               lambda b, c, h: (0, 0, 0, c))],
        out_specs=pl.BlockSpec((1, th, Wo, tco), lambda b, c, h: (b, h, 0, c)),
        scratch_shapes=[pltpu.VMEM((th * Wo, tco), jnp.float32)],
        compiler_params=pltpu.CompilerParams(
            dimension_semantics=("parallel", "parallel", "parallel")),
    )(xp, w)


# ----------------------------------------------------------------------------
# Convolution dispatcher: 1x1 -> pure matmul, 3x3/s1 -> direct kernel,
# otherwise (7x7 stem, strided 3x3) -> im2col + tiled matmul.
# ----------------------------------------------------------------------------

def _im2col(x, kh, kw, stride, pad):
    B, H, W, Cin = x.shape
    xp = jnp.pad(x, ((0, 0), (pad, pad), (pad, pad), (0, 0)))
    Ho = (H + 2 * pad - kh) // stride + 1
    Wo = (W + 2 * pad - kw) // stride + 1
    cols = []
    for di in range(kh):
        for dj in range(kw):
            cols.append(xp[:, di:di + stride * (Ho - 1) + 1:stride,
                           dj:dj + stride * (Wo - 1) + 1:stride, :])
    patches = cols[0] if len(cols) == 1 else jnp.concatenate(cols, axis=-1)
    return patches.reshape(B * Ho * Wo, kh * kw * Cin), Ho, Wo


def conv2d(x, w, stride, pad):
    """x: (B, H, W, Cin) NHWC, w: (kh, kw, Cin, Cout), no bias."""
    kh, kw, Cin, Cout = w.shape
    if kh == 1 and kw == 1:
        assert pad == 0
        if stride > 1:
            x = x[:, ::stride, ::stride, :]
        B, H, W, _ = x.shape
        out = pallas_matmul(x.reshape(B * H * W, Cin), w.reshape(Cin, Cout))
        return out.reshape(B, H, W, Cout)
    if kh == 3 and kw == 3 and stride == 1 and pad == 1 and x.shape[2] % 8 == 0:
        return conv3x3_s1(x, w)
    # TODO(synk): strided 3x3 / 7x7 stem still go through HBM im2col; a phase-split
    # direct kernel would remove the remaining (small) expansion.
    B = x.shape[0]
    a, Ho, Wo = _im2col(x, kh, kw, stride, pad)
    out = pallas_matmul(a, w.reshape(kh * kw * Cin, Cout))
    return out.reshape(B, Ho, Wo, Cout)


# ----------------------------------------------------------------------------
# Conditional BatchNorm: MLP deltas (tiny kernel) + two-pass tiled global
# mean/var + tiled normalize/affine (with optional fused residual add + ReLU).
# ----------------------------------------------------------------------------

def _cbn_delta_kernel(lstm_ref, wg1, bg1, wg2, bg2, wb1, bb1, wb2, bb2,
                      gam0, bet0, gam_o, bet_o):
    lstm = lstm_ref[...]
    hg = jnp.maximum(jnp.dot(lstm, wg1[...], preferred_element_type=jnp.float32)
                     + bg1[...], 0.0)
    dgam = jnp.dot(hg, wg2[...], preferred_element_type=jnp.float32) + bg2[...]
    hb = jnp.maximum(jnp.dot(lstm, wb1[...], preferred_element_type=jnp.float32)
                     + bb1[...], 0.0)
    dbet = jnp.dot(hb, wb2[...], preferred_element_type=jnp.float32) + bb2[...]
    gam_o[...] = gam0[...] + dgam
    bet_o[...] = bet0[...] + dbet


def _cbn_stats_kernel(f_ref, sum_o, sq_o):
    # Accumulate per-channel sum / sum-of-squares across the whole grid; the
    # (1, C) output blocks stay VMEM-resident (constant block index).
    @pl.when((pl.program_id(0) == 0) & (pl.program_id(1) == 0))
    def _():
        sum_o[...] = jnp.zeros_like(sum_o)
        sq_o[...] = jnp.zeros_like(sq_o)

    x = f_ref[...]                                   # (1, th, W, C)
    sum_o[...] += jnp.sum(x, axis=(0, 1, 2))[None, :]
    sq_o[...] += jnp.sum(x * x, axis=(0, 1, 2))[None, :]


def _cbn_norm_kernel(apply_relu, has_res, eps, n_elems, *refs):
    if has_res:
        f_ref, r_ref, gam_ref, bet_ref, sum_ref, sq_ref, o_ref = refs
    else:
        f_ref, gam_ref, bet_ref, sum_ref, sq_ref, o_ref = refs
        r_ref = None
    # Global scalar mean and unbiased variance (torch.mean / torch.var semantics).
    total = jnp.sum(sum_ref[...])
    total_sq = jnp.sum(sq_ref[...])
    mean = total / n_elems
    var = (total_sq - n_elems * mean * mean) / (n_elems - 1.0)
    inv_std = 1.0 / jnp.sqrt(var + eps)
    gam = gam_ref[...][:, :, None, :]                # (1, 1, 1, C)
    bet = bet_ref[...][:, :, None, :]
    out = (f_ref[...] - mean) * inv_std * gam + bet
    if has_res:
        out = out + r_ref[...]
    if apply_relu:
        out = jnp.maximum(out, 0.0)
    o_ref[...] = out


def cbn_apply(feature, lstm_emb, p, apply_relu, residual=None, eps=1e-5):
    B, H, W, C = feature.shape

    # --- delta beta/gamma MLPs + per-(batch, channel) affine params (tiny) ---
    delta_args = (lstm_emb, p["wg1"], p["bg1"], p["wg2"], p["bg2"],
                  p["wb1"], p["bb1"], p["wb2"], p["bb2"],
                  p["gammas"], p["betas"])
    delta_specs = [pl.BlockSpec(a.shape, lambda i, nd=a.ndim: (0,) * nd)
                   for a in delta_args]
    gam, bet = pl.pallas_call(
        _cbn_delta_kernel,
        out_shape=(jax.ShapeDtypeStruct((B, C), jnp.float32),
                   jax.ShapeDtypeStruct((B, C), jnp.float32)),
        grid=(1,),
        in_specs=delta_specs,
        out_specs=(pl.BlockSpec((B, C), lambda i: (0, 0)),
                   pl.BlockSpec((B, C), lambda i: (0, 0))),
    )(*delta_args)

    th = _pick_h_tile(H, W * C * 4)
    grid = (B, H // th)
    fmap_spec = pl.BlockSpec((1, th, W, C), lambda b, h: (b, h, 0, 0))
    vec_spec = pl.BlockSpec((1, C), lambda b, h: (0, 0))

    # --- pass 1: tiled global sum / sum-of-squares ---
    sums, sqs = pl.pallas_call(
        _cbn_stats_kernel,
        out_shape=(jax.ShapeDtypeStruct((1, C), jnp.float32),
                   jax.ShapeDtypeStruct((1, C), jnp.float32)),
        grid=grid,
        in_specs=[fmap_spec],
        out_specs=(vec_spec, vec_spec),
        compiler_params=pltpu.CompilerParams(
            dimension_semantics=("arbitrary", "arbitrary")),
    )(feature)

    # --- pass 2: tiled normalize + affine (+ fused residual add) (+ ReLU) ---
    gam3 = gam.reshape(B, 1, C)
    bet3 = bet.reshape(B, 1, C)
    bc_spec = pl.BlockSpec((1, 1, C), lambda b, h: (b, 0, 0))
    has_res = residual is not None
    args = [feature] + ([residual] if has_res else []) + [gam3, bet3, sums, sqs]
    in_specs = ([fmap_spec] * (2 if has_res else 1)
                + [bc_spec, bc_spec, vec_spec, vec_spec])
    n_elems = float(B * H * W * C)
    return pl.pallas_call(
        partial(_cbn_norm_kernel, apply_relu, has_res, eps, n_elems),
        out_shape=jax.ShapeDtypeStruct((B, H, W, C), jnp.float32),
        grid=grid,
        in_specs=in_specs,
        out_specs=fmap_spec,
        compiler_params=pltpu.CompilerParams(
            dimension_semantics=("parallel", "parallel")),
    )(*args)


# ----------------------------------------------------------------------------
# MaxPool2d(kernel_size=3, stride=2, padding=1): strided output computed
# directly (phase decomposition), no dense intermediate.
# ----------------------------------------------------------------------------

def _maxpool3x3_s2_kernel(p00_ref, p01_ref, p10_ref, p11_ref, o_ref):
    Ho, Wo = o_ref.shape[1], o_ref.shape[2]
    p00 = p00_ref[...]            # (1, Ho+1, Wo+1, C)
    p01 = p01_ref[...]            # (1, Ho+1, Wo,   C)
    p10 = p10_ref[...]            # (1, Ho,   Wo+1, C)
    p11 = p11_ref[...]            # (1, Ho,   Wo,   C)
    a = jnp.maximum(jnp.maximum(p00[:, :Ho, :Wo, :], p00[:, :Ho, 1:, :]),
                    jnp.maximum(p00[:, 1:, :Wo, :], p00[:, 1:, 1:, :]))
    b = jnp.maximum(p01[:, :Ho, :, :], p01[:, 1:, :, :])
    c = jnp.maximum(p10[:, :, :Wo, :], p10[:, :, 1:, :])
    o_ref[...] = jnp.maximum(jnp.maximum(a, b), jnp.maximum(c, p11))


def maxpool_3x3_s2_p1(x):
    B, H, W, C = x.shape
    Ho = (H + 2 - 3) // 2 + 1
    Wo = (W + 2 - 3) // 2 + 1
    xp = jnp.pad(x, ((0, 0), (1, 1), (1, 1), (0, 0)), constant_values=-jnp.inf)
    p00 = xp[:, 0::2, 0::2, :][:, :Ho + 1, :Wo + 1, :]
    p01 = xp[:, 0::2, 1::2, :][:, :Ho + 1, :Wo, :]
    p10 = xp[:, 1::2, 0::2, :][:, :Ho, :Wo + 1, :]
    p11 = xp[:, 1::2, 1::2, :][:, :Ho, :Wo, :]
    phases = (p00, p01, p10, p11)
    in_specs = [pl.BlockSpec((1,) + ph.shape[1:], lambda b: (b, 0, 0, 0))
                for ph in phases]
    return pl.pallas_call(
        _maxpool3x3_s2_kernel,
        out_shape=jax.ShapeDtypeStruct((B, Ho, Wo, C), jnp.float32),
        grid=(B,),
        in_specs=in_specs,
        out_specs=pl.BlockSpec((1, Ho, Wo, C), lambda b: (b, 0, 0, 0)),
        compiler_params=pltpu.CompilerParams(
            dimension_semantics=("parallel",)),
    )(*phases)


# ----------------------------------------------------------------------------
# Deterministic parameter construction (mirrors the PyTorch inits)
# ----------------------------------------------------------------------------

def conv_init(key, kh, kw, cin, cout):
    n = kh * kw * cout
    return jax.random.normal(key, (kh, kw, cin, cout), jnp.float32) * math.sqrt(2.0 / n)


def make_cbn_params(key, lstm_size, emb_size, channels, batch):
    k1, k2, k3, k4 = jax.random.split(key, 4)

    def xavier(k, fin, fout):
        bound = math.sqrt(6.0 / (fin + fout))
        return jax.random.uniform(k, (fin, fout), jnp.float32, -bound, bound)

    return dict(
        wg1=xavier(k1, lstm_size, emb_size),
        bg1=jnp.full((1, emb_size), 0.1, jnp.float32),
        wg2=xavier(k2, emb_size, channels),
        bg2=jnp.full((1, channels), 0.1, jnp.float32),
        wb1=xavier(k3, lstm_size, emb_size),
        bb1=jnp.full((1, emb_size), 0.1, jnp.float32),
        wb2=xavier(k4, emb_size, channels),
        bb2=jnp.full((1, channels), 0.1, jnp.float32),
        betas=jnp.zeros((batch, channels), jnp.float32),
        gammas=jnp.ones((batch, channels), jnp.float32),
    )


def make_bottleneck_params(key, inplanes, planes, lstm_size, emb_size,
                           batch, stride, has_down):
    keys = jax.random.split(key, 8)
    p = dict(
        conv1=conv_init(keys[0], 1, 1, inplanes, planes),
        cbn1=make_cbn_params(keys[1], lstm_size, emb_size, planes, batch),
        conv2=conv_init(keys[2], 3, 3, planes, planes),
        cbn2=make_cbn_params(keys[3], lstm_size, emb_size, planes, batch),
        conv3=conv_init(keys[4], 1, 1, planes, planes * EXPANSION),
        cbn3=make_cbn_params(keys[5], lstm_size, emb_size,
                             planes * EXPANSION, batch),
        stride=stride,
        has_down=has_down,
    )
    if has_down:
        p["convd"] = conv_init(keys[6], 1, 1, inplanes, planes * EXPANSION)
        p["cbnd"] = make_cbn_params(keys[7], lstm_size, emb_size,
                                    planes * EXPANSION, batch)
    return p


def make_resnet_params(key, layers, lstm_size, emb_size, batch):
    keys = jax.random.split(key, 6)
    params = dict(
        conv1=conv_init(keys[0], 7, 7, 3, 64),
        bn1=make_cbn_params(keys[1], lstm_size, emb_size, 64, batch),
    )
    inplanes = 64
    layer_params = []
    for li, (planes, blocks, stride) in enumerate(
            zip((64, 128, 256, 512), layers, (1, 2, 2, 2))):
        lkeys = jax.random.split(keys[2 + li], blocks)
        blks = []
        for bi in range(blocks):
            s = stride if bi == 0 else 1
            has_down = (bi == 0) and (s != 1 or inplanes != planes * EXPANSION)
            blks.append(make_bottleneck_params(
                lkeys[bi], inplanes, planes, lstm_size, emb_size,
                batch, s, has_down))
            inplanes = planes * EXPANSION
        layer_params.append(blks)
    params["layers"] = layer_params
    return params


# ----------------------------------------------------------------------------
# Forward pass
# ----------------------------------------------------------------------------

def bottleneck_forward(p, x, lstm_emb):
    out = conv2d(x, p["conv1"], stride=1, pad=0)
    out = cbn_apply(out, lstm_emb, p["cbn1"], apply_relu=True)
    out = conv2d(out, p["conv2"], stride=p["stride"], pad=1)
    out = cbn_apply(out, lstm_emb, p["cbn2"], apply_relu=True)
    out = conv2d(out, p["conv3"], stride=1, pad=0)
    if p["has_down"]:
        residual = conv2d(x, p["convd"], stride=p["stride"], pad=0)
        residual = cbn_apply(residual, lstm_emb, p["cbnd"], apply_relu=False)
    else:
        residual = x
    # CBN on conv3 output, residual add and final ReLU fused into one pass.
    return cbn_apply(out, lstm_emb, p["cbn3"], apply_relu=True, residual=residual)


def resnet_forward(params, x_nchw, lstm_emb):
    # NCHW (PyTorch) -> NHWC (kernel layout)
    x = jnp.transpose(x_nchw, (0, 2, 3, 1)).astype(jnp.float32)
    x = conv2d(x, params["conv1"], stride=2, pad=3)              # conv1 7x7/2
    x = cbn_apply(x, lstm_emb, params["bn1"], apply_relu=True)   # bn1 + relu
    x = maxpool_3x3_s2_p1(x)                                     # maxpool
    for blks in params["layers"]:                                # layer1..layer4
        for p in blks:
            x = bottleneck_forward(p, x, lstm_emb)
    # back to NCHW to match the PyTorch module's output convention
    return jnp.transpose(x, (0, 3, 1, 2))


# ----------------------------------------------------------------------------
# Demo
# ----------------------------------------------------------------------------

if __name__ == "__main__":
    key = jax.random.PRNGKey(0)
    kp, kx, kl = jax.random.split(key, 3)

    BATCH, HEIGHT, WIDTH = 2, 64, 64
    LSTM_SIZE, EMB_SIZE = 32, 32
    LAYERS = (1, 1, 1, 1)   # small synthetic config (one Bottleneck per stage)

    params = make_resnet_params(kp, LAYERS, LSTM_SIZE, EMB_SIZE, BATCH)
    x = jax.random.normal(kx, (BATCH, 3, HEIGHT, WIDTH), jnp.float32)   # NCHW
    lstm_emb = jax.random.normal(kl, (BATCH, LSTM_SIZE), jnp.float32)

    out = resnet_forward(params, x, lstm_emb)
    out = jax.block_until_ready(out)

    assert out.shape == (BATCH, 512 * EXPANSION, HEIGHT // 32, WIDTH // 32), out.shape
    assert bool(jnp.isfinite(out).all())
    print("KERNEL_OK")
</pallas_src>

<mosaic_0001>
module attributes {stable_mosaic.version = 11 : i64} {
  func.func @_matmul_kernel(%arg0: i32, %arg1: i32, %arg2: i32, %arg3: memref<256x256xf32, #tpu.memory_space<vmem>>, %arg4: memref<256x128xf32, #tpu.memory_space<vmem>>, %arg5: memref<256x128xf32, #tpu.memory_space<vmem>>, %arg6: memref<256x128xf32, #tpu.memory_space<vmem>>) attributes {dimension_semantics = [#tpu.dimension_semantics<parallel>, #tpu.dimension_semantics<parallel>, #tpu.dimension_semantics<arbitrary>], iteration_bounds = array<i64: 8, 1, 1>, scalar_prefetch = 0 : i64, scratch_operands = 1 : i64, tpu.core_type = #tpu.core_type<tc>, window_params = [{transform_indices = @transform_0, window_bounds = array<i64: 256, 256>}, {transform_indices = @transform_1, window_bounds = array<i64: 256, 128>}, {transform_indices = @transform_2, window_bounds = array<i64: 256, 128>}]} {
    %c0_i32 = arith.constant 0 : i32
    %0 = arith.cmpi eq, %arg2, %c0_i32 : i32
    %1 = arith.extui %0 : i1 to i32
    %c0_i32_0 = arith.constant 0 : i32
    %2 = arith.cmpi ne, %1, %c0_i32_0 : i32
    scf.if %2 {
      %cst_10 = arith.constant 0.000000e+00 : f32
      %12 = vector.broadcast %cst_10 : f32 to vector<256x128xf32>
      %c0_11 = arith.constant 0 : index
      %c0_12 = arith.constant 0 : index
      %13 = vector.load %arg6[%c0_11, %c0_12] : memref<256x128xf32, #tpu.memory_space<vmem>>, vector<256x128xf32>
      tpu.vector_store %arg6[%c0_11, %c0_12], %12 {strides = array<i32>} : memref<256x128xf32, #tpu.memory_space<vmem>>, vector<256x128xf32>,
    } else {
    }
    %c0 = arith.constant 0 : index
    %c0_1 = arith.constant 0 : index
    %3 = vector.load %arg6[%c0, %c0_1] : memref<256x128xf32, #tpu.memory_space<vmem>>, vector<256x128xf32>
    %c0_2 = arith.constant 0 : index
    %c0_3 = arith.constant 0 : index
    %4 = vector.load %arg3[%c0_2, %c0_3] : memref<256x256xf32, #tpu.memory_space<vmem>>, vector<256x256xf32>
    %c0_4 = arith.constant 0 : index
    %c0_5 = arith.constant 0 : index
    %5 = vector.load %arg4[%c0_4, %c0_5] : memref<256x128xf32, #tpu.memory_space<vmem>>, vector<256x128xf32>
    %cst = arith.constant dense<0.000000e+00> : vector<256x128xf32>
    %6 = tpu.matmul %4, %5, %cst {dimension_numbers = #tpu.dot_dimension_numbers<[1], [0], [0], [1], [0, 0, 1, 1], [], []>} : vector<256x256xf32>, vector<256x128xf32>, vector<256x128xf32> -> vector<256x128xf32>
    %7 = arith.addf %3, %6 : vector<256x128xf32>
    %c0_6 = arith.constant 0 : index
    %c0_7 = arith.constant 0 : index
    %8 = vector.load %arg6[%c0_6, %c0_7] : memref<256x128xf32, #tpu.memory_space<vmem>>, vector<256x128xf32>
    tpu.vector_store %arg6[%c0_6, %c0_7], %7 {strides = array<i32>} : memref<256x128xf32, #tpu.memory_space<vmem>>, vector<256x128xf32>,
    %c0_i32_8 = arith.constant 0 : i32
    %9 = arith.cmpi eq, %arg2, %c0_i32_8 : i32
    %10 = arith.extui %9 : i1 to i32
    %c0_i32_9 = arith.constant 0 : i32
    %11 = arith.cmpi ne, %10, %c0_i32_9 : i32
    scf.if %11 {
      %c0_10 = arith.constant 0 : index
      %c0_11 = arith.constant 0 : index
      %12 = vector.load %arg6[%c0_10, %c0_11] : memref<256x128xf32, #tpu.memory_space<vmem>>, vector<256x128xf32>
      %c0_12 = arith.constant 0 : index
      %c0_13 = arith.constant 0 : index
      %13 = vector.load %arg5[%c0_12, %c0_13] : memref<256x128xf32, #tpu.memory_space<vmem>>, vector<256x128xf32>
      tpu.vector_store %arg5[%c0_12, %c0_13], %12 {strides = array<i32>} : memref<256x128xf32, #tpu.memory_space<vmem>>, vector<256x128xf32>,
    } else {
    }
    return
  }
  func.func @transform_0(%arg0: i32, %arg1: i32, %arg2: i32) -> (i32, i32) {
    %c0_i32 = arith.constant 0 : i32
    return %arg0, %arg2 : i32, i32
  }
  func.func @transform_1(%arg0: i32, %arg1: i32, %arg2: i32) -> (i32, i32) {
    %c0_i32 = arith.constant 0 : i32
    return %arg2, %arg1 : i32, i32
  }
  func.func @transform_2(%arg0: i32, %arg1: i32, %arg2: i32) -> (i32, i32) {
    %c0_i32 = arith.constant 0 : i32
    return %arg0, %arg1 : i32, i32
  }
}

</mosaic_0001>

<bundles_post_ra>
// kernel: tpu_custom_call.1
= control target key start
LH: loop header
LB: loop body
LE: loop exit
PB: predicated region body
PF: predicated region fallthrough
CT: control target
= control target key end

     0   :  { %7 = vsyncpa [#allocation4], 0  ;;  %s1414_s0 = inlined_call_operand.hbm [shape: f32[2048,256], index: 0, kind: input, shape index: {}]   ;;  %s1415_s1 = inlined_call_operand.hbm [shape: f32[256,128], index: 1, kind: input, shape index: {}]   ;;  %s1416_s2 = inlined_call_operand.hbm [shape: f32[2048,128], index: 2, kind: output, shape index: {}]  }
   0x1   :  { %9 = vsyncpa [#allocation4 + $0x1], 0 }
   0x2   :  { %10 = vsyncpa [#allocation7], 0 }
   0x3   :  { %11 = vsyncpa [#allocation5], 0 }
   0x4   :  { %13 = vsyncpa [#allocation5 + $0x1], 0  ;;  %s1165_s9 = smov 0   ;;  %s1167_s10 = smov 0  }
   0x5   :  { %s1169_s11 = smov 0   ;;  %s1171_s12 = smov 0  }
   0x6   :  { %s1173_s13 = smov 0   ;;  %s1175_s14 = smov 0  }
   0x7 LB: > { %s863_s15 = sadd.s32 4294967295, %s1141_s14   ;;  %s864_s16 = sadd.s32 4294967294, %s1141_s14   ;;  %s1141_s14 = sphi %s1175_s14, %s19_s14   ;;  %s1137_s13 = sphi %s1173_s13, %s1428_s13   ;;  %s1133_s12 = sphi %s1171_s12, %s1427_s12   ;;  %s1129_s11 = sphi %s1169_s11, %s1426_s11   ;;  %s1125_s10 = sphi %s1167_s10, %s1425_s10   ;;  %s1121_s9 = sphi %s1165_s9, %s1424_s9  }
   0x8   : > { %p60_p0 = scmp.ne.s32.totalorder %s1125_s10, %s1121_s9  ;;  %p1199_p1 = scmp.eq.s32.totalorder %s863_s15, 0 }
   0x9   : > { %p1203_p2 = scmp.eq.s32.totalorder %s863_s15, 7  ;;  %p120_p3 = scmp.eq.s32.totalorder %s864_s16, 7 }
   0xa   : > { %p1209_p4 = por %p1199_p1, %p60_p0  ;;  %p865_p5 = scmp.ge.s32.totalorder %s1141_s14, 1 }
   0xb   : > { %p1214_p6 = por %p120_p3, %p60_p0  ;;  %p127_p7 = scmp.lt.s32.totalorder %s1141_s14, 9 }
   0xc   : > { %s142_s23 = sshll.u32 %s1415_s1, 4  ;;  %s1143_s25 = smov [#allocation6]   ;;  %s143_s23 = int_to_ptr.hbm [resolvable:$true] %s142_s23 }
   0xd   : > { %p1222_p8 = pnand %p865_p5, %p127_p7  ;;  %s144_s26 = sshll.u32 %s1143_s25, 4  ;;  %s145_s26 = int_to_ptr.vmem [resolvable:$true] %s144_s26 }
   0xe   : > { %s1144_s27 = smov 128   ;;  %s1145_s28 = smov 8  }
   0xf   : > { %p924_p9 = pneg %p1222_p8  ;;  %s38_s29 = sadd.s32 1, %s1137_s13 }
  0x10   : > { %p40_p11 = scmp.ge.s32.totalorder %s38_s29, 8  ;;  %s47_s30 = sadd.s32 1, %s1129_s11 }
  0x11   : > { %p925_p10 = pnand %p924_p9, %p1199_p1  ;;  %p54_p12 = scmp.ne.s32.totalorder %s1129_s11, %s1125_s10 }
  0x12   : > { %p55_p13 = scmp.eq.s32.totalorder %s1141_s14, 0  ;;  %s1430_s29 = smov (%p40_p11, %s38_s29), 0 }
  0x13   : > { %927 = dma.hbm_to_vmem [thread:$0]  (!%p925_p10), %s143_s23, 4096, %s145_s26, [#allocation7], %s1144_s27, %s1144_s27, %s1145_s28  }
  0x14   : > { %p1237_p0 = por %p55_p13, %p54_p12  ;;  %p1243_p3 = por %p1203_p2, %p54_p12 }
  0x15   : > { %s42_s5 = ssub.s32 %s1137_s13, %s1430_s29  ;;  %p937_p5 = scmp.lt.s32.totalorder %s1141_s14, 8 }
  0x16   : > { %p45_p7 = scmp.eq.s32.totalorder %s42_s5, 0  ;;  %s158_s6 = sand.u32 1, %s1129_s11  }
  0x17   : > { %s868_s7 = sshll.u32 %s158_s6, 9  ;;  %s882_s15 = sshll.u32 %s1137_s13, 9 }
  0x18   : > { %s1252_s8 = scalar_select %p45_p7, %s1129_s11, %s47_s30  }
  0x19   : > { %s170_s22 = scalar_lea.hbm %s1414_s0, %s882_s15  ;;  %s162_s23 = scalar_lea.vmem [#allocation3], %s868_s7 }
  0x1a   : > { %s173_s25 = sshll.u32 %s162_s23, 4  ;;  %s171_s18 = sshll.u32 %s170_s22, 4  ;;  %s174_s25 = int_to_ptr.vmem [resolvable:$true] %s173_s25  ;;  %s172_s18 = int_to_ptr.hbm [resolvable:$true] %s171_s18 }
  0x1b   : > { %p929_p2 = pnand %p937_p5, %p1237_p0  ;;  %s159_s26 = scalar_lea.sflag [#allocation4], %s158_s6 }
  0x1c   : > { %s1146_s27 = smov 256   ;;  %s1147_s28 = smov 16  }
  0x1d   : > { %931 = dma.hbm_to_vmem [thread:$0]  (!%p929_p2), %s172_s18, 8192, %s174_s25, %s159_s26, %s1146_s27, %s1146_s27, %s1147_s28  }
  0x1e   : > { %185 = sbr.rel (%p1222_p8) target bundleno = 329 (0x149), region = 28  ;;  %s1263_s30 = sand.u32 (!%p1222_p8), 1, %s1125_s10  }
  0x1f   : > { %s873_s5 = sshll.u32 (!%p1222_p8), %s1263_s30, 9  ;;  %s188_s7 = scalar_lea.sflag (!%p1222_p8), [#allocation4], %s1263_s30 }
  0x20   : > { %s1267_s15 = scalar_lea.vmem (!%p1222_p8), [#allocation3], %s873_s5 }
  0x23   : > { %1108 = dma.done.wait (%p1209_p4), %s188_s7, 8192  }
  0x24   : > { %1110 = vsyncadd (%p1209_p4), %s188_s7, 4294959104 }
  0x25   : > { %1112 = dma.done.wait (%p1199_p1), [#allocation7], 4096  }
  0x26   : > { %1114 = vsyncadd (%p1199_p1), [#allocation7], 4294963200  ;;  %v369_v0 = vld [vmem:[#allocation6 + $0x78] sm:$0xff]  ;;  %v368_v2 = vld [vmem:[#allocation6 + $0x70] sm:$0xff]  ;;  %s875_s17 = sshll.u32 %s1263_s30, 8  ;;  %s883_s24 = sshll.u32 %s1133_s12, 8 }
  0x27   : > { %v385_v1 = vld [vmem:[#allocation6 + $0xf8] sm:$0xff]  ;;  %884 = vmatpush.msra.mxu2 %v369_v0  ;;  %v384_v3 = vld [vmem:[#allocation6 + $0xf0] sm:$0xff]  ;;  %v367_v4 = vld [vmem:[#allocation6 + $0x68] sm:$0xff]  ;;  %386 = vmatpush.msra.mxu0 %v369_v0  ;;  %s1342_s19 = scalar_lea.vmem [#allocation8], %s875_s17  ;;  %s756_s16 = scalar_lea.hbm %s1416_s2, %s883_s24 }
  0x28   : > { %900 = vmatpush.msra.mxu3 %v385_v1  ;;  %v383_v5 = vld [vmem:[#allocation6 + $0xe8] sm:$0xff]  ;;  %499 = vmatpush.msra.mxu1 %v385_v1  ;;  %v366_v6 = vld [vmem:[#allocation6 + $0x60] sm:$0xff]  ;;  %v365_v8 = vld [vmem:[#allocation6 + $0x58] sm:$0xff]  ;;  %s757_s21 = sshll.u32 %s1342_s19, 4  ;;  %s759_s22 = sshll.u32 %s756_s16, 4  ;;  %s758_s21 = int_to_ptr.vmem [resolvable:$true] %s757_s21  ;;  %s760_s22 = int_to_ptr.hbm [resolvable:$true] %s759_s22 }
  0x29   : > { %885 = vmatpush.msra.mxu2 %v368_v2  ;;  %v382_v7 = vld [vmem:[#allocation6 + $0xe0] sm:$0xff]  ;;  %387 = vmatpush.msra.mxu0 %v368_v2  ;;  %v381_v9 = vld [vmem:[#allocation6 + $0xd8] sm:$0xff]  ;;  %v364_v10 = vld [vmem:[#allocation6 + $0x50] sm:$0xff]  ;;  %s744_s12 = scalar_lea.sflag [#allocation5], %s1263_s30  ;;  %s1069_s23 = sshra.s32 %s760_s22, 4  ;;  %s1070_s23 = int_to_ptr.hbm [resolvable:$true] %s1069_s23 }
  0x2a   : > { %901 = vmatpush.msra.mxu3 %v384_v3  ;;  %500 = vmatpush.msra.mxu1 %v384_v3  ;;  %v380_v11 = vld [vmem:[#allocation6 + $0xd0] sm:$0xff]  ;;  %v363_v12 = vld [vmem:[#allocation6 + $0x48] sm:$0xff]  ;;  %v362_v14 = vld [vmem:[#allocation6 + $0x40] sm:$0xff]  ;;  %s1071_s25 = scalar_lea.hbm %s1070_s23, 256  ;;  %s1075_s27 = scalar_lea.hbm %s1416_s2, 2048 }
  0x2b   : > { %886 = vmatpush.msra.mxu2 %v367_v4  ;;  %388 = vmatpush.msra.mxu0 %v367_v4  ;;  %v379_v13 = vld [vmem:[#allocation6 + $0xc8] sm:$0xff]  ;;  %v378_v15 = vld [vmem:[#allocation6 + $0xc0] sm:$0xff]  ;;  %v361_v16 = vld [vmem:[#allocation6 + $0x38] sm:$0xff]  ;;  %p1072_p1 = scmp.ne.s32.totalorder %s1070_s23, %s1071_s25  ;;  %p1076_p9 = scmp.lt.s32.totalorder %s1070_s23, %s1416_s2 }
  0x2c   : > { %902 = vmatpush.msra.mxu3 %v383_v5  ;;  %501 = vmatpush.msra.mxu1 %v383_v5  ;;  %v377_v17 = vld [vmem:[#allocation6 + $0xb8] sm:$0xff]  ;;  %v360_v18 = vld [vmem:[#allocation6 + $0x30] sm:$0xff]  ;;  %v359_v20 = vld [vmem:[#allocation6 + $0x28] sm:$0xff]  ;;  %p1077_p10 = scmp.lt.s32.totalorder %s1075_s27, %s1071_s25 }
  0x2d   : > { %887 = vmatpush.msra.mxu2 %v366_v6  ;;  %389 = vmatpush.msra.mxu0 %v366_v6  ;;  %v376_v19 = vld [vmem:[#allocation6 + $0xb0] sm:$0xff]  ;;  %v375_v21 = vld [vmem:[#allocation6 + $0xa8] sm:$0xff]  ;;  %v358_v22 = vld [vmem:[#allocation6 + $0x20] sm:$0xff]  ;;  %p1073_p4 = pnand %p1072_p1, %p1243_p3 }
  0x2e   : > { %903 = vmatpush.msra.mxu3 %v382_v7  ;;  %502 = vmatpush.msra.mxu1 %v382_v7  ;;  %v374_v23 = vld [vmem:[#allocation6 + $0xa0] sm:$0xff]  ;;  %v357_v24 = vld [vmem:[#allocation6 + $0x18] sm:$0xff]  ;;  %v356_v26 = vld [vmem:[#allocation6 + $0x10] sm:$0xff]  ;;  %p1078_p11 = por %p1077_p10, %p1076_p9 }
  0x2f   : > { %888 = vmatpush.msra.mxu2 %v365_v8  ;;  %390 = vmatpush.msra.mxu0 %v365_v8  ;;  %v373_v25 = vld [vmem:[#allocation6 + $0x98] sm:$0xff]  ;;  %v372_v27 = vld [vmem:[#allocation6 + $0x90] sm:$0xff]  ;;  %v355_v28 = vld [vmem:[#allocation6 + $0x8] sm:$0xff]  ;;  %p1074_p8 = pneg %p1073_p4 }
  0x30   : > { %904 = vmatpush.msra.mxu3 %v381_v9  ;;  %503 = vmatpush.msra.mxu1 %v381_v9  ;;  %v371_v29 = vld [vmem:[#allocation6 + $0x88] sm:$0xff]  ;;  %v354_v30 = vld [vmem:[#allocation6] sm:$0xff]  ;;  %v324_v36 = vld [vmem:[%s1267_s15 + $0x110] sm:$0xff] }
  0x31   : > { %889 = vmatpush.msra.mxu2 %v364_v10  ;;  %391 = vmatpush.msra.mxu0 %v364_v10  ;;  %v370_v31 = vld [vmem:[#allocation6 + $0x80] sm:$0xff]  ;;  %v323_v33 = vld [vmem:[%s1267_s15 + $0x108] sm:$0xff]  ;;  %v325_v37 = vld [vmem:[%s1267_s15 + $0x118] sm:$0xff]  ;;  %p1079_p12 = pnand %p1078_p11, %p1074_p8 }
  0x32   : > { %905 = vmatpush.msra.mxu3 %v380_v11  ;;  %504 = vmatpush.msra.mxu1 %v380_v11  ;;  %v322_v32 = vld [vmem:[%s1267_s15 + $0x100] sm:$0xff]  ;;  %v291_v35 = vld [vmem:[%s1267_s15 + $0x8] sm:$0xff]  ;;  %v292_v38 = vld [vmem:[%s1267_s15 + $0x10] sm:$0xff] }
  0x33   : > { %890 = vmatpush.msra.mxu2 %v363_v12  ;;  %392 = vmatpush.msra.mxu0 %v363_v12  ;;  %v290_v34 = vld [vmem:[%s1267_s15] sm:$0xff]  ;;  %v293_v39 = vld [vmem:[%s1267_s15 + $0x18] sm:$0xff]  ;;  %v327_v41 = vld [vmem:[%s1267_s15 + $0x128] sm:$0xff] }
  0x34   : > { %906 = vmatpush.msra.mxu3 %v379_v13  ;;  %505 = vmatpush.msra.mxu1 %v379_v13  ;;  %v326_v40 = vld [vmem:[%s1267_s15 + $0x120] sm:$0xff]  ;;  %v295_v43 = vld [vmem:[%s1267_s15 + $0x28] sm:$0xff]  ;;  %v328_v44 = vld [vmem:[%s1267_s15 + $0x130] sm:$0xff] }
  0x35   : > { %891 = vmatpush.msra.mxu2 %v362_v14  ;;  %393 = vmatpush.msra.mxu0 %v362_v14  ;;  %v294_v42 = vld [vmem:[%s1267_s15 + $0x20] sm:$0xff]  ;;  %v329_v45 = vld [vmem:[%s1267_s15 + $0x138] sm:$0xff]  ;;  %v296_v46 = vld [vmem:[%s1267_s15 + $0x30] sm:$0xff] }
  0x36   : > { %907 = vmatpush.msra.mxu3 %v378_v15  ;;  %506 = vmatpush.msra.mxu1 %v378_v15  ;;  %v297_v47 = vld [vmem:[%s1267_s15 + $0x38] sm:$0xff]  ;;  %v330_v48 = vld [vmem:[%s1267_s15 + $0x140] sm:$0xff]  ;;  %v331_v49 = vld [vmem:[%s1267_s15 + $0x148] sm:$0xff] }
  0x37   : > { %892 = vmatpush.msra.mxu2 %v361_v16  ;;  %394 = vmatpush.msra.mxu0 %v361_v16  ;;  %v298_v50 = vld [vmem:[%s1267_s15 + $0x40] sm:$0xff]  ;;  %v299_v51 = vld [vmem:[%s1267_s15 + $0x48] sm:$0xff]  ;;  %v332_v52 = vld [vmem:[%s1267_s15 + $0x150] sm:$0xff] }
  0x38   : > { %908 = vmatpush.msra.mxu3 %v377_v17  ;;  %507 = vmatpush.msra.mxu1 %v377_v17  ;;  %v333_v53 = vld [vmem:[%s1267_s15 + $0x158] sm:$0xff]  ;;  %v300_v54 = vld [vmem:[%s1267_s15 + $0x50] sm:$0xff]  ;;  %v334_v56 = vld [vmem:[%s1267_s15 + $0x160] sm:$0xff] }
  0x39   : > { %893 = vmatpush.msra.mxu2 %v360_v18  ;;  %395 = vmatpush.msra.mxu0 %v360_v18  ;;  %v301_v55 = vld [vmem:[%s1267_s15 + $0x58] sm:$0xff]  ;;  %v335_v57 = vld [vmem:[%s1267_s15 + $0x168] sm:$0xff]  ;;  %v302_v58 = vld [vmem:[%s1267_s15 + $0x60] sm:$0xff] }
  0x3a   : > { %909 = vmatpush.msra.mxu3 %v376_v19  ;;  %508 = vmatpush.msra.mxu1 %v376_v19  ;;  %v303_v59 = vld [vmem:[%s1267_s15 + $0x68] sm:$0xff]  ;;  %v336_v60 = vld [vmem:[%s1267_s15 + $0x170] sm:$0xff]  ;;  %v337_v61 = vld [vmem:[%s1267_s15 + $0x178] sm:$0xff] }
  0x3b   : > { %894 = vmatpush.msra.mxu2 %v359_v20  ;;  %396 = vmatpush.msra.mxu0 %v359_v20  ;;  %v304_v62 = vld [vmem:[%s1267_s15 + $0x70] sm:$0xff]  ;;  %v305_v63 = vld [vmem:[%s1267_s15 + $0x78] sm:$0xff]  ;;  %v338_v0 = vld [vmem:[%s1267_s15 + $0x180] sm:$0xff] }
  0x3c   : > { %910 = vmatpush.msra.mxu3 %v375_v21  ;;  %509 = vmatpush.msra.mxu1 %v375_v21  ;;  %v339_v1 = vld [vmem:[%s1267_s15 + $0x188] sm:$0xff]  ;;  %v306_v2 = vld [vmem:[%s1267_s15 + $0x80] sm:$0xff]  ;;  %v340_v4 = vld [vmem:[%s1267_s15 + $0x190] sm:$0xff] }
  0x3d   : > { %895 = vmatpush.msra.mxu2 %v358_v22  ;;  %397 = vmatpush.msra.mxu0 %v358_v22  ;;  %v307_v3 = vld [vmem:[%s1267_s15 + $0x88] sm:$0xff]  ;;  %v341_v5 = vld [vmem:[%s1267_s15 + $0x198] sm:$0xff]  ;;  %v308_v6 = vld [vmem:[%s1267_s15 + $0x90] sm:$0xff] }
  0x3e   : > { %911 = vmatpush.msra.mxu3 %v374_v23  ;;  %510 = vmatpush.msra.mxu1 %v374_v23  ;;  %v309_v7 = vld [vmem:[%s1267_s15 + $0x98] sm:$0xff]  ;;  %v342_v8 = vld [vmem:[%s1267_s15 + $0x1a0] sm:$0xff]  ;;  %v343_v9 = vld [vmem:[%s1267_s15 + $0x1a8] sm:$0xff] }
  0x3f   : > { %896 = vmatpush.msra.mxu2 %v357_v24  ;;  %398 = vmatpush.msra.mxu0 %v357_v24  ;;  %v310_v10 = vld [vmem:[%s1267_s15 + $0xa0] sm:$0xff]  ;;  %v311_v11 = vld [vmem:[%s1267_s15 + $0xa8] sm:$0xff]  ;;  %v344_v12 = vld [vmem:[%s1267_s15 + $0x1b0] sm:$0xff] }
  0x40   : > { %912 = vmatpush.msra.mxu3 %v373_v25  ;;  %511 = vmatpush.msra.mxu1 %v373_v25  ;;  %v345_v13 = vld [vmem:[%s1267_s15 + $0x1b8] sm:$0xff]  ;;  %v312_v14 = vld [vmem:[%s1267_s15 + $0xb0] sm:$0xff]  ;;  %v346_v16 = vld [vmem:[%s1267_s15 + $0x1c0] sm:$0xff] }
  0x41   : > { %897 = vmatpush.msra.mxu2 %v356_v26  ;;  %399 = vmatpush.msra.mxu0 %v356_v26  ;;  %v313_v15 = vld [vmem:[%s1267_s15 + $0xb8] sm:$0xff]  ;;  %v347_v17 = vld [vmem:[%s1267_s15 + $0x1c8] sm:$0xff]  ;;  %v314_v18 = vld [vmem:[%s1267_s15 + $0xc0] sm:$0xff] }
  0x42   : > { %913 = vmatpush.msra.mxu3 %v372_v27  ;;  %512 = vmatpush.msra.mxu1 %v372_v27  ;;  %v315_v19 = vld [vmem:[%s1267_s15 + $0xc8] sm:$0xff]  ;;  %v348_v20 = vld [vmem:[%s1267_s15 + $0x1d0] sm:$0xff]  ;;  %v349_v21 = vld [vmem:[%s1267_s15 + $0x1d8] sm:$0xff] }
  0x43   : > { %898 = vmatpush.msra.mxu2 %v355_v28  ;;  %400 = vmatpush.msra.mxu0 %v355_v28  ;;  %v316_v22 = vld [vmem:[%s1267_s15 + $0xd0] sm:$0xff]  ;;  %v317_v23 = vld [vmem:[%s1267_s15 + $0xd8] sm:$0xff]  ;;  %v350_v24 = vld [vmem:[%s1267_s15 + $0x1e0] sm:$0xff] }
  0x44   : > { %914 = vmatpush.msra.mxu3 %v371_v29  ;;  %513 = vmatpush.msra.mxu1 %v371_v29  ;;  %v351_v25 = vld [vmem:[%s1267_s15 + $0x1e8] sm:$0xff]  ;;  %v318_v26 = vld [vmem:[%s1267_s15 + $0xe0] sm:$0xff]  ;;  %v352_v28 = vld [vmem:[%s1267_s15 + $0x1f0] sm:$0xff] }
  0x45   : > { %899 = vmatpush.msra.mxu2 %v354_v30  ;;  %401 = vmatpush.msra.mxu0 %v354_v30  ;;  %v319_v27 = vld [vmem:[%s1267_s15 + $0xe8] sm:$0xff]  ;;  %v353_v29 = vld [vmem:[%s1267_s15 + $0x1f8] sm:$0xff]  ;;  %v320_v30 = vld [vmem:[%s1267_s15 + $0xf0] sm:$0xff] }
  0x46   : > { %915 = vmatpush.msra.mxu3 %v370_v31  ;;  %450 = vmatmul.f32.vlgmr.msra.gmra.mxu2 %v322_v32 }
  0x47   : > { %563 = vmatmul.f32.vlgmr.msra.gmra.mxu3 %v323_v33  ;;  %514 = vmatpush.msra.mxu1 %v370_v31  ;;  %v321_v31 = vld [vmem:[%s1267_s15 + $0xf8] sm:$0xff] }
  0x48   : > { %402 = vmatmul.f32.vlgmr.msra.gmra.mxu0 %v290_v34  ;;  %515 = vmatmul.f32.vlgmr.msra.gmra.mxu1 %v291_v35 }
  0x4e   : > { %453 = vmatmul.f32.gmra.mxu2 %v324_v36 }
  0x4f   : > { %566 = vmatmul.f32.gmra.mxu3 %v325_v37 }
  0x50   : > { %405 = vmatmul.f32.gmra.mxu0 %v292_v38  ;;  %518 = vmatmul.f32.gmra.mxu1 %v293_v39 }
  0x56   : > { %456 = vmatmul.f32.gmra.mxu2 %v326_v40 }
  0x57   : > { %569 = vmatmul.f32.gmra.mxu3 %v327_v41 }
  0x58   : > { %408 = vmatmul.f32.gmra.mxu0 %v294_v42  ;;  %521 = vmatmul.f32.gmra.mxu1 %v295_v43 }
  0x5e   : > { %459 = vmatmul.f32.gmra.mxu2 %v328_v44 }
  0x5f   : > { %572 = vmatmul.f32.gmra.mxu3 %v329_v45 }
  0x60   : > { %411 = vmatmul.f32.gmra.mxu0 %v296_v46  ;;  %524 = vmatmul.f32.gmra.mxu1 %v297_v47 }
  0x66   : > { %462 = vmatmul.f32.gmra.mxu2 %v330_v48 }
  0x67   : > { %575 = vmatmul.f32.gmra.mxu3 %v331_v49 }
  0x68   : > { %414 = vmatmul.f32.gmra.mxu0 %v298_v50  ;;  %527 = vmatmul.f32.gmra.mxu1 %v299_v51 }
  0x6e   : > { %465 = vmatmul.f32.gmra.mxu2 %v332_v52 }
  0x6f   : > { %578 = vmatmul.f32.gmra.mxu3 %v333_v53 }
  0x70   : > { %417 = vmatmul.f32.gmra.mxu0 %v300_v54  ;;  %530 = vmatmul.f32.gmra.mxu1 %v301_v55 }
  0x76   : > { %468 = vmatmul.f32.gmra.mxu2 %v334_v56 }
  0x77   : > { %581 = vmatmul.f32.gmra.mxu3 %v335_v57 }
  0x78   : > { %420 = vmatmul.f32.gmra.mxu0 %v302_v58  ;;  %533 = vmatmul.f32.gmra.mxu1 %v303_v59 }
  0x7e   : > { %471 = vmatmul.f32.gmra.mxu2 %v336_v60 }
  0x7f   : > { %584 = vmatmul.f32.gmra.mxu3 %v337_v61 }
  0x80   : > { %423 = vmatmul.f32.gmra.mxu0 %v304_v62  ;;  %536 = vmatmul.f32.gmra.mxu1 %v305_v63 }
  0x86   : > { %474 = vmatmul.f32.gmra.mxu2 %v338_v0 }
  0x87   : > { %587 = vmatmul.f32.gmra.mxu3 %v339_v1 }
  0x88   : > { %426 = vmatmul.f32.gmra.mxu0 %v306_v2  ;;  %539 = vmatmul.f32.gmra.mxu1 %v307_v3 }
  0x8e   : > { %477 = vmatmul.f32.gmra.mxu2 %v340_v4 }
  0x8f   : > { %590 = vmatmul.f32.gmra.mxu3 %v341_v5 }
  0x90   : > { %429 = vmatmul.f32.gmra.mxu0 %v308_v6  ;;  %542 = vmatmul.f32.gmra.mxu1 %v309_v7 }
  0x96   : > { %480 = vmatmul.f32.gmra.mxu2 %v342_v8 }
  0x97   : > { %593 = vmatmul.f32.gmra.mxu3 %v343_v9 }
  0x98   : > { %432 = vmatmul.f32.gmra.mxu0 %v310_v10  ;;  %545 = vmatmul.f32.gmra.mxu1 %v311_v11 }
  0x9e   : > { %483 = vmatmul.f32.gmra.mxu2 %v344_v12 }
  0x9f   : > { %596 = vmatmul.f32.gmra.mxu3 %v345_v13 }
  0xa0   : > { %435 = vmatmul.f32.gmra.mxu0 %v312_v14  ;;  %548 = vmatmul.f32.gmra.mxu1 %v313_v15 }
  0xa6   : > { %486 = vmatmul.f32.gmra.mxu2 %v346_v16 }
  0xa7   : > { %599 = vmatmul.f32.gmra.mxu3 %v347_v17 }
  0xa8   : > { %438 = vmatmul.f32.gmra.mxu0 %v314_v18  ;;  %551 = vmatmul.f32.gmra.mxu1 %v315_v19 }
  0xae   : > { %489 = vmatmul.f32.gmra.mxu2 %v348_v20 }
  0xaf   : > { %602 = vmatmul.f32.gmra.mxu3 %v349_v21 }
  0xb0   : > { %441 = vmatmul.f32.gmra.mxu0 %v316_v22  ;;  %554 = vmatmul.f32.gmra.mxu1 %v317_v23 }
  0xb6   : > { %492 = vmatmul.f32.gmra.mxu2 %v350_v24 }
  0xb7   : > { %605 = vmatmul.f32.gmra.mxu3 %v351_v25 }
  0xb8   : > { %444 = vmatmul.f32.gmra.mxu0 %v318_v26  ;;  %557 = vmatmul.f32.gmra.mxu1 %v319_v27 }
  0xbe   : > { %495 = vmatmul.f32.gmra.mxu2 %v352_v28 }
  0xbf   : > { %608 = vmatmul.f32.gmra.mxu3 %v353_v29 }
  0xc0   : > { %447 = vmatmul.f32.gmra.mxu0 %v320_v30  ;;  %560 = vmatmul.f32.gmra.mxu1 %v321_v31 }
  0xc5   : > { %v403_v32 = vpop.f32.mrf.mxu0  ;;  %v516_v33 = vpop.f32.mrf.mxu1 }
  0xc6   : > { %v517_v34 = vadd.f32 %v516_v33, %v403_v32 }
  0xc8   : > { %711 = vst [vmem:[%s1342_s19] sm:$0xff] %v517_v34 }
  0xc9   : > { %v451_v35 = vpop.f32.mrf.mxu2 }
  0xca   : > { %v564_v36 = vpop.f32.mrf.mxu3 }
  0xcb   : > { %v565_v37 = vadd.f32 %v564_v36, %v451_v35 }
  0xcd   : > { %727 = vst [vmem:[%s1342_s19 + $0x80] sm:$0xff] %v565_v37  ;;  %v406_v38 = vpop.f32.mrf.mxu0  ;;  %v519_v39 = vpop.f32.mrf.mxu1 }
  0xce   : > { %v520_v40 = vadd.f32 %v519_v39, %v406_v38 }
  0xd0   : > { %712 = vst [vmem:[%s1342_s19 + $0x8] sm:$0xff] %v520_v40 }
  0xd1   : > { %v454_v41 = vpop.f32.mrf.mxu2 }
  0xd2   : > { %v567_v42 = vpop.f32.mrf.mxu3 }
  0xd3   : > { %v568_v43 = vadd.f32 %v567_v42, %v454_v41 }
  0xd5   : > { %728 = vst [vmem:[%s1342_s19 + $0x88] sm:$0xff] %v568_v43  ;;  %v409_v44 = vpop.f32.mrf.mxu0  ;;  %v522_v45 = vpop.f32.mrf.mxu1 }
  0xd6   : > { %v523_v46 = vadd.f32 %v522_v45, %v409_v44 }
  0xd8   : > { %713 = vst [vmem:[%s1342_s19 + $0x10] sm:$0xff] %v523_v46 }
  0xd9   : > { %v457_v47 = vpop.f32.mrf.mxu2 }
  0xda   : > { %v570_v48 = vpop.f32.mrf.mxu3 }
  0xdb   : > { %v571_v49 = vadd.f32 %v570_v48, %v457_v47 }
  0xdd   : > { %729 = vst [vmem:[%s1342_s19 + $0x90] sm:$0xff] %v571_v49  ;;  %v412_v50 = vpop.f32.mrf.mxu0  ;;  %v525_v51 = vpop.f32.mrf.mxu1 }
  0xde   : > { %v526_v52 = vadd.f32 %v525_v51, %v412_v50 }
  0xe0   : > { %714 = vst [vmem:[%s1342_s19 + $0x18] sm:$0xff] %v526_v52 }
  0xe1   : > { %v460_v53 = vpop.f32.mrf.mxu2 }
  0xe2   : > { %v573_v54 = vpop.f32.mrf.mxu3 }
  0xe3   : > { %v574_v55 = vadd.f32 %v573_v54, %v460_v53 }
  0xe5   : > { %730 = vst [vmem:[%s1342_s19 + $0x98] sm:$0xff] %v574_v55  ;;  %v415_v56 = vpop.f32.mrf.mxu0  ;;  %v528_v57 = vpop.f32.mrf.mxu1 }
  0xe6   : > { %v529_v58 = vadd.f32 %v528_v57, %v415_v56 }
  0xe8   : > { %715 = vst [vmem:[%s1342_s19 + $0x20] sm:$0xff] %v529_v58 }
  0xe9   : > { %v463_v59 = vpop.f32.mrf.mxu2 }
  0xea   : > { %v576_v60 = vpop.f32.mrf.mxu3 }
  0xeb   : > { %v577_v61 = vadd.f32 %v576_v60, %v463_v59 }
  0xed   : > { %731 = vst [vmem:[%s1342_s19 + $0xa0] sm:$0xff] %v577_v61  ;;  %v418_v62 = vpop.f32.mrf.mxu0  ;;  %v531_v63 = vpop.f32.mrf.mxu1 }
  0xee   : > { %v532_v0 = vadd.f32 %v531_v63, %v418_v62 }
  0xf0   : > { %716 = vst [vmem:[%s1342_s19 + $0x28] sm:$0xff] %v532_v0 }
  0xf1   : > { %v466_v1 = vpop.f32.mrf.mxu2 }
  0xf2   : > { %v579_v2 = vpop.f32.mrf.mxu3 }
  0xf3   : > { %v580_v3 = vadd.f32 %v579_v2, %v466_v1 }
  0xf5   : > { %732 = vst [vmem:[%s1342_s19 + $0xa8] sm:$0xff] %v580_v3  ;;  %v421_v4 = vpop.f32.mrf.mxu0  ;;  %v534_v5 = vpop.f32.mrf.mxu1 }
  0xf6   : > { %v535_v6 = vadd.f32 %v534_v5, %v421_v4 }
  0xf8   : > { %717 = vst [vmem:[%s1342_s19 + $0x30] sm:$0xff] %v535_v6 }
  0xf9   : > { %v469_v7 = vpop.f32.mrf.mxu2 }
  0xfa   : > { %v582_v8 = vpop.f32.mrf.mxu3 }
  0xfb   : > { %v583_v9 = vadd.f32 %v582_v8, %v469_v7 }
  0xfd   : > { %733 = vst [vmem:[%s1342_s19 + $0xb0] sm:$0xff] %v583_v9  ;;  %v424_v10 = vpop.f32.mrf.mxu0  ;;  %v537_v11 = vpop.f32.mrf.mxu1 }
  0xfe   : > { %v538_v12 = vadd.f32 %v537_v11, %v424_v10 }
 0x100   : > { %718 = vst [vmem:[%s1342_s19 + $0x38] sm:$0xff] %v538_v12 }
 0x101   : > { %v472_v13 = vpop.f32.mrf.mxu2 }
 0x102   : > { %v585_v14 = vpop.f32.mrf.mxu3 }
 0x103   : > { %v586_v15 = vadd.f32 %v585_v14, %v472_v13 }
 0x105   : > { %734 = vst [vmem:[%s1342_s19 + $0xb8] sm:$0xff] %v586_v15  ;;  %v427_v16 = vpop.f32.mrf.mxu0  ;;  %v540_v17 = vpop.f32.mrf.mxu1 }
 0x106   : > { %v541_v18 = vadd.f32 %v540_v17, %v427_v16 }
 0x108   : > { %719 = vst [vmem:[%s1342_s19 + $0x40] sm:$0xff] %v541_v18 }
 0x109   : > { %v475_v19 = vpop.f32.mrf.mxu2 }
 0x10a   : > { %v588_v20 = vpop.f32.mrf.mxu3 }
 0x10b   : > { %v589_v21 = vadd.f32 %v588_v20, %v475_v19 }
 0x10d   : > { %735 = vst [vmem:[%s1342_s19 + $0xc0] sm:$0xff] %v589_v21  ;;  %v430_v22 = vpop.f32.mrf.mxu0  ;;  %v543_v23 = vpop.f32.mrf.mxu1 }
 0x10e   : > { %v544_v24 = vadd.f32 %v543_v23, %v430_v22 }
 0x110   : > { %720 = vst [vmem:[%s1342_s19 + $0x48] sm:$0xff] %v544_v24 }
 0x111   : > { %v478_v25 = vpop.f32.mrf.mxu2 }
 0x112   : > { %v591_v26 = vpop.f32.mrf.mxu3 }
 0x113   : > { %v592_v27 = vadd.f32 %v591_v26, %v478_v25 }
 0x115   : > { %736 = vst [vmem:[%s1342_s19 + $0xc8] sm:$0xff] %v592_v27  ;;  %v433_v28 = vpop.f32.mrf.mxu0  ;;  %v546_v29 = vpop.f32.mrf.mxu1 }
 0x116   : > { %v547_v30 = vadd.f32 %v546_v29, %v433_v28 }
 0x118   : > { %721 = vst [vmem:[%s1342_s19 + $0x50] sm:$0xff] %v547_v30 }
 0x119   : > { %v481_v31 = vpop.f32.mrf.mxu2 }
 0x11a   : > { %v594_v32 = vpop.f32.mrf.mxu3 }
 0x11b   : > { %v595_v33 = vadd.f32 %v594_v32, %v481_v31 }
 0x11d   : > { %737 = vst [vmem:[%s1342_s19 + $0xd0] sm:$0xff] %v595_v33  ;;  %v436_v34 = vpop.f32.mrf.mxu0  ;;  %v549_v35 = vpop.f32.mrf.mxu1 }
 0x11e   : > { %v550_v36 = vadd.f32 %v549_v35, %v436_v34 }
 0x120   : > { %722 = vst [vmem:[%s1342_s19 + $0x58] sm:$0xff] %v550_v36 }
 0x121   : > { %v484_v37 = vpop.f32.mrf.mxu2 }
 0x122   : > { %v597_v38 = vpop.f32.mrf.mxu3 }
 0x123   : > { %v598_v39 = vadd.f32 %v597_v38, %v484_v37 }
 0x125   : > { %738 = vst [vmem:[%s1342_s19 + $0xd8] sm:$0xff] %v598_v39  ;;  %v439_v40 = vpop.f32.mrf.mxu0  ;;  %v552_v41 = vpop.f32.mrf.mxu1 }
 0x126   : > { %v553_v42 = vadd.f32 %v552_v41, %v439_v40 }
 0x128   : > { %723 = vst [vmem:[%s1342_s19 + $0x60] sm:$0xff] %v553_v42 }
 0x129   : > { %v487_v43 = vpop.f32.mrf.mxu2 }
 0x12a   : > { %v600_v44 = vpop.f32.mrf.mxu3 }
 0x12b   : > { %v601_v45 = vadd.f32 %v600_v44, %v487_v43 }
 0x12d   : > { %739 = vst [vmem:[%s1342_s19 + $0xe0] sm:$0xff] %v601_v45  ;;  %v442_v46 = vpop.f32.mrf.mxu0  ;;  %v555_v47 = vpop.f32.mrf.mxu1 }
 0x12e   : > { %v556_v48 = vadd.f32 %v555_v47, %v442_v46 }
 0x130   : > { %724 = vst [vmem:[%s1342_s19 + $0x68] sm:$0xff] %v556_v48 }
 0x131   : > { %v490_v49 = vpop.f32.mrf.mxu2 }
 0x132   : > { %v603_v50 = vpop.f32.mrf.mxu3 }
 0x133   : > { %v604_v51 = vadd.f32 %v603_v50, %v490_v49 }
 0x135   : > { %740 = vst [vmem:[%s1342_s19 + $0xe8] sm:$0xff] %v604_v51  ;;  %v445_v52 = vpop.f32.mrf.mxu0  ;;  %v558_v53 = vpop.f32.mrf.mxu1 }
 0x136   : > { %v559_v54 = vadd.f32 %v558_v53, %v445_v52 }
 0x138   : > { %725 = vst [vmem:[%s1342_s19 + $0x70] sm:$0xff] %v559_v54 }
 0x139   : > { %v493_v55 = vpop.f32.mrf.mxu2 }
 0x13a   : > { %v606_v56 = vpop.f32.mrf.mxu3 }
 0x13b   : > { %v607_v57 = vadd.f32 %v606_v56, %v493_v55 }
 0x13d   : > { %741 = vst [vmem:[%s1342_s19 + $0xf0] sm:$0xff] %v607_v57  ;;  %v448_v58 = vpop.f32.mrf.mxu0  ;;  %v561_v59 = vpop.f32.mrf.mxu1 }
 0x13e   : > { %v562_v60 = vadd.f32 %v561_v59, %v448_v58 }
 0x140   : > { %726 = vst [vmem:[%s1342_s19 + $0x78] sm:$0xff] %v562_v60 }
 0x141   : > { %v496_v61 = vpop.f32.mrf.mxu2 }
 0x142   : > { %v609_v62 = vpop.f32.mrf.mxu3 }
 0x143   : > { %v610_v63 = vadd.f32 %v609_v62, %v496_v61 }
 0x145   : > { %742 = vst [vmem:[%s1342_s19 + $0xf8] sm:$0xff] %v610_v63 }
 0x146   : > { %1082 = shalt.err (!%p1079_p12)
}
 0x147   : > { %s1148_s30 = smov 128   ;;  %s1149_s7 = smov 8  }
 0x148   : > { %922 = dma.vmem_to_hbm [thread:$0]  (%p1243_p3), %s758_s21, 4096, %s760_s22, %s744_s12, %s1148_s30, %s1148_s30, %s1149_s7  }
 0x149 PF: > { %p939_p13 = scmp.ge.s32.totalorder %s1141_s14, 2  ;;  %s774_s15 = sand.u32 1, %s1121_s9  }
 0x14a   : > { %s775_s17 = scalar_lea.sflag [#allocation5], %s774_s15 }
 0x14b   : > { %p933_p0 = pnand %p939_p13, %p1214_p6 }
 0x14d   : > { %p934_p5 = pneg %p933_p0 }
 0x14f   : > { %1116 = dma.done.wait (%p934_p5), %s775_s17, 4096  }
 0x150   : > { %1118 = vsyncadd (%p934_p5), %s775_s17, 4294963200  ;;  %s19_s14 = sadd.s32 1, %s1141_s14   ;;  %s1424_s9 = smov %s1125_s10 }
 0x151   : > { %p16_p7 = scmp.ge.s32.totalorder %s19_s14, 10   ;;  %s1425_s10 = smov %s1129_s11 }
 0x152   : > { %s1426_s11 = smov %s1252_s8  ;;  %s1427_s12 = smov %s1137_s13 }
 0x153   : > { %s1428_s13 = smov %s1430_s29  ;;  %18 = sbr.rel (!%p16_p7) target bundleno = 7 (0x7), region = 86 }
 0x158   :  { %781 = vsyncpa [#allocation4], 1 }
 0x159   :  { %783 = vsyncpa [#allocation4 + $0x1], 1 }
 0x15a   :  { %784 = vsyncpa [#allocation7], 1 }
 0x15b   :  { %785 = vsyncpa [#allocation5], 1 }
 0x15c   :  { %787 = vsyncpa [#allocation5 + $0x1], 1 }

</bundles_post_ra>
